<compile_context>
chip_gen: v7x
topology: tpu7x:2x2x1
jax: 0.10.0
libtpu: 0.0.40
codegen_flags: <defaults>
</compile_context>

<pallas_src>
import functools

import jax
import jax.numpy as jnp
import numpy as np
from jax.experimental import pallas as pl
from jax.experimental.pallas import tpu as pltpu


def _round_up(x, m):
    return (x + m - 1) // m * m


@functools.lru_cache(maxsize=1)
def _tpu_config():
    """Per-generation tiling / VMEM knobs (v5e/v6e: 128 MiB VMEM, v7x: 64 MiB/TC)."""
    vmem_cap = 128 * 1024 * 1024
    kind = ""
    try:
        vmem_cap = int(pltpu.get_tpu_info().vmem_capacity_bytes)
    except Exception:
        pass
    try:
        kind = jax.devices()[0].device_kind.lower()
    except Exception:
        pass
    small_vmem = vmem_cap <= 80 * 1024 * 1024          # v7x-class (64 MiB / TC)
    is_v5 = "v5" in kind
    return {
        # leave headroom under the physical budget; the tight cap only needs
        # to bind on v7x's 64 MiB VMEM.
        "vmem_limit": (52 if small_vmem else 100) * 1024 * 1024,
        # when W is streamed it is re-fetched once per row block, so big row
        # tiles buy arithmetic intensity (v6e/v7x need ~650 FLOP per W byte);
        # v5e's roofline knee is ~240 FLOP/byte so 512 is enough there.
        "tile_rows": 512 if is_v5 else 1024,
        "tile_v": 1024,
        # extra W stream buffer on v5e to hide DMA jitter when streaming
        "w_buffers": 3 if is_v5 else 2,
        # v7x megacore: keep >=2 row blocks so the parallel row axis shards
        "two_cores": small_vmem,
    }


# ----------------------------------------------------------------------------
# Fused kernel: tanh -> bf16 matmul (vocab-tiled, online softmax) -> masked NLL
# ----------------------------------------------------------------------------
def _make_lm_loss_kernel(v_real, v_padded, tile_v, w_resident):
    has_vocab_pad = v_padded != v_real

    def kernel(x_ref, w_ref, tgt_ref, msk_ref, nll_ref,
               xb_ref, m_ref, s_ref, t_ref):
        j = pl.program_id(1)
        nv = pl.num_programs(1)

        @pl.when(j == 0)
        def _init():
            # tanh + bf16 cast of the hidden tile once per row block; the
            # tile then stays VMEM-resident across the whole vocab sweep.
            xb_ref[...] = jnp.tanh(x_ref[...]).astype(xb_ref.dtype)
            m_ref[...] = jnp.full_like(m_ref, -jnp.inf)   # running max
            s_ref[...] = jnp.zeros_like(s_ref)            # running sum-exp
            t_ref[...] = jnp.zeros_like(t_ref)            # target logit

        if w_resident:
            # W_out lives fully in VMEM (constant block index -> DMA'd once
            # for the entire grid); slice the current vocab tile in-kernel.
            off = pl.multiple_of(j * tile_v, 128)
            w_tile = w_ref[:, pl.ds(off, tile_v)]
        else:
            w_tile = w_ref[...]

        # (TR, H) bf16 @ (H, TV) bf16 -> (TR, TV) f32 on the MXU.
        logits = jnp.dot(xb_ref[...], w_tile,
                         preferred_element_type=jnp.float32)

        # target gather: local column ids 0..TV-1 compared against the
        # per-row (tgt - j*TV) vector — no (TR, TV) iota+add per step.
        local_col = jax.lax.broadcasted_iota(jnp.int32, logits.shape, 1)
        tgt_local = tgt_ref[...] - j * tile_v             # (TR, 1) int32
        # NOTE: out-of-range target ids contribute 0; safe because padded
        # rows always carry mask 0 and real targets are < vocab_size.
        t_ref[...] += jnp.sum(jnp.where(local_col == tgt_local, logits, 0.0),
                              axis=-1, keepdims=True)

        if has_vocab_pad:
            # zero-padded vocab columns must not pollute logsumexp.
            lim = v_real - j * tile_v                     # scalar
            logits = jnp.where(local_col < lim, logits, -jnp.inf)

        # online softmax statistics.
        m_prev = m_ref[...]
        m_new = jnp.maximum(m_prev, jnp.max(logits, axis=-1, keepdims=True))
        alpha = jnp.exp(m_prev - m_new)
        s_ref[...] = alpha * s_ref[...] + jnp.sum(jnp.exp(logits - m_new),
                                                  axis=-1, keepdims=True)
        m_ref[...] = m_new

        @pl.when(j == nv - 1)
        def _finalize():
            # -logprob(target) = logsumexp(logits) - target_logit
            lse = m_ref[...] + jnp.log(s_ref[...])
            nll_ref[...] = (lse - t_ref[...]) * msk_ref[...]

    return kernel


def lm_masked_nll_loss(h_pre, w_out, targets, mask, *,
                       tile_rows=None, tile_v=None, w_resident=None):
    """h_pre: (R, H) f32 pre-tanh hidden states; w_out: (H, V) f32;
    targets: (R,) int; mask: (R,) f32.  Returns the scalar masked-NLL loss
    (losses.LanguageModelCriterion)."""
    R, H = h_pre.shape
    V = w_out.shape[1]
    cfg = _tpu_config()

    # ---- vocab tile: multiple of 128; vocab padded up to a tile multiple and
    # the padded columns masked to -inf inside the kernel.
    if tile_v is None:
        tile_v = cfg["tile_v"]
    tile_v = _round_up(min(tile_v, _round_up(V, 128)), 128)
    Vp = _round_up(V, tile_v)

    # ---- row tile: per-generation default, multiple of 8, clamped to the
    # problem; on v7x keep >=2 row blocks for megacore sharding.
    auto_rows = tile_rows is None
    if auto_rows:
        tile_rows = cfg["tile_rows"]
    Rp8 = _round_up(R, 8)
    tile_rows = max(8, min(_round_up(tile_rows, 8), Rp8))
    if auto_rows and cfg["two_cores"] and Rp8 >= 16:
        tile_rows = min(tile_rows, max(8, (Rp8 // 2) // 8 * 8))
    Rp = _round_up(R, tile_rows)

    if Rp != R:
        pad = Rp - R
        h_pre = jnp.pad(h_pre, ((0, pad), (0, 0)))
        targets = jnp.pad(targets, (0, pad))      # padded rows carry mask 0
        mask = jnp.pad(mask, (0, pad))

    w_bf = w_out.astype(jnp.bfloat16)             # halve W streaming bytes
    if Vp != V:
        w_bf = jnp.pad(w_bf, ((0, 0), (0, Vp - V)))
    tgt2 = targets.reshape(Rp, 1).astype(jnp.int32)
    msk2 = mask.reshape(Rp, 1).astype(jnp.float32)

    # ---- W placement: fully VMEM-resident (fetched once for the whole grid)
    # when it fits comfortably; otherwise streamed (H, tile_v) slices.
    w_bytes = H * Vp * 2
    if w_resident is None:
        w_resident = w_bytes <= cfg["vmem_limit"] // 4
    if w_resident:
        w_spec = pl.BlockSpec((H, Vp), lambda i, j: (0, 0))
    elif cfg["w_buffers"] != 2:
        w_spec = pl.BlockSpec((H, tile_v), lambda i, j: (0, j),
                              pipeline_mode=pl.Buffered(cfg["w_buffers"]))
    else:
        w_spec = pl.BlockSpec((H, tile_v), lambda i, j: (0, j))

    grid = (Rp // tile_rows, Vp // tile_v)
    kernel = _make_lm_loss_kernel(v_real=V, v_padded=Vp, tile_v=tile_v,
                                  w_resident=w_resident)

    nll = pl.pallas_call(
        kernel,
        out_shape=jax.ShapeDtypeStruct((Rp, 1), jnp.float32),
        grid_spec=pltpu.PrefetchScalarGridSpec(
            num_scalar_prefetch=0,
            grid=grid,
            in_specs=[
                pl.BlockSpec((tile_rows, H), lambda i, j: (i, 0)),  # h_pre tile
                w_spec,                                             # W_out
                pl.BlockSpec((tile_rows, 1), lambda i, j: (i, 0)),  # targets
                pl.BlockSpec((tile_rows, 1), lambda i, j: (i, 0)),  # mask
            ],
            out_specs=pl.BlockSpec((tile_rows, 1), lambda i, j: (i, 0)),
            scratch_shapes=[
                pltpu.VMEM((tile_rows, H), jnp.bfloat16),   # tanh'd bf16 hidden
                pltpu.VMEM((tile_rows, 1), jnp.float32),    # running max
                pltpu.VMEM((tile_rows, 1), jnp.float32),    # running sum-exp
                pltpu.VMEM((tile_rows, 1), jnp.float32),    # target logit
            ],
        ),
        compiler_params=pltpu.CompilerParams(
            dimension_semantics=("parallel", "arbitrary"),
            vmem_limit_bytes=cfg["vmem_limit"]),
    )(h_pre, w_bf, tgt2, msk2)

    # tiny final reduction in plain JAX (keeps the row grid axis parallel).
    # NOTE: matches the reference semantics (NaN if sum(mask) == 0).
    return jnp.sum(nll) / jnp.sum(msk2)


# ----------------------------------------------------------------------------
# LossWrapper equivalent (default LM-loss branch only)
# ----------------------------------------------------------------------------
class LossWrapperPallas:
    def __init__(self, vocab_size, hidden, fc_dim, key,
                 tile_rows=None, tile_v=None):
        k1, k2, k3 = jax.random.split(key, 3)
        # deterministic synthetic "model" parameters
        self.emb = jax.random.normal(k1, (vocab_size, hidden), jnp.float32) * 0.1
        self.w_fc = jax.random.normal(k2, (fc_dim, hidden), jnp.float32) * 0.1
        self.w_out = jax.random.normal(k3, (hidden, vocab_size), jnp.float32) * 0.1
        self.tile_rows = tile_rows
        self.tile_v = tile_v

    def _model_hidden_pre(self, fc_feats, att_feats, labels_in, att_masks):
        # glue: embedding gather + fc conditioning (tiny); tanh is fused into
        # the Pallas kernel so only the pre-activation touches HBM once.
        del att_feats, att_masks
        B, T = labels_in.shape
        tok = jnp.take(self.emb, labels_in, axis=0)                 # (B, T, H)
        cond = jnp.dot(fc_feats, self.w_fc)[:, None, :]             # (B, 1, H)
        return (tok + cond).reshape(B * T, -1)                      # pre-tanh

    def forward(self, fc_feats, att_feats, labels, masks, att_masks,
                gts, gt_indices, sc_flag, struc_flag, clip_vis_feats=None):
        assert not sc_flag and not struc_flag, "only the LM-loss branch is kernelized"
        out = {}
        labels_in = labels[..., :-1]                                # (B, L-1)
        targets = labels[..., 1:].reshape(-1)                       # (B*(L-1),)
        mask = masks[..., 1:].reshape(-1).astype(jnp.float32)

        h_pre = self._model_hidden_pre(fc_feats, att_feats, labels_in, att_masks)
        loss = lm_masked_nll_loss(h_pre, self.w_out, targets, mask,
                                  tile_rows=self.tile_rows, tile_v=self.tile_v)
        out['loss'] = loss
        return out


# ----------------------------------------------------------------------------
# Pure-JAX reference for sanity checking (same bf16 MXU numerics)
# ----------------------------------------------------------------------------
def _reference_loss(wrapper, fc_feats, att_feats, labels, masks, att_masks):
    labels_in = labels[..., :-1]
    targets = labels[..., 1:].reshape(-1)
    mask = masks[..., 1:].reshape(-1).astype(jnp.float32)
    h_pre = wrapper._model_hidden_pre(fc_feats, att_feats, labels_in, att_masks)
    x_bf = jnp.tanh(h_pre).astype(jnp.bfloat16)
    w_bf = wrapper.w_out.astype(jnp.bfloat16)
    logits = jnp.dot(x_bf, w_bf, preferred_element_type=jnp.float32)
    logprobs = jax.nn.log_softmax(logits, axis=-1)
    lp_t = jnp.take_along_axis(logprobs, targets.reshape(-1, 1), axis=-1)[:, 0]
    return jnp.sum(-lp_t * mask) / jnp.sum(mask)


if __name__ == "__main__":
    key = jax.random.PRNGKey(0)
    k_fc, k_att, k_lab, k_par = jax.random.split(key, 4)

    B, L, V, H, FC_DIM, N_ATT, ATT_DIM = 2, 9, 512, 32, 16, 4, 16
    # L-1 = 8 prediction steps -> R = B*(L-1) = 16 rows

    fc_feats = jax.random.normal(k_fc, (B, FC_DIM), jnp.float32)
    att_feats = jax.random.normal(k_att, (B, N_ATT, ATT_DIM), jnp.float32)
    labels = jax.random.randint(k_lab, (B, L), 1, V, dtype=jnp.int32)
    # masks: first 7 / 6 positions valid (deterministic)
    masks = jnp.stack([
        (jnp.arange(L) < 7).astype(jnp.float32),
        (jnp.arange(L) < 6).astype(jnp.float32),
    ], axis=0)
    att_masks = jnp.ones((B, N_ATT), jnp.float32)
    gts, gt_indices = None, None   # unused in the LM-loss branch

    wrapper = LossWrapperPallas(vocab_size=V, hidden=H, fc_dim=FC_DIM, key=k_par)

    # default per-generation auto-tiled path (this is the LossWrapper.forward
    # equivalent that production code would call)
    out = wrapper.forward(fc_feats, att_feats, labels, masks, att_masks,
                          gts, gt_indices, sc_flag=False, struc_flag=False)
    loss = jax.block_until_ready(out['loss'])

    ref = jax.block_until_ready(
        _reference_loss(wrapper, fc_feats, att_feats, labels, masks, att_masks))
    np.testing.assert_allclose(np.asarray(loss), np.asarray(ref),
                               rtol=1e-4, atol=1e-4)

    # additionally exercise (at toy tile sizes) the multi-row-block /
    # multi-vocab-tile online-softmax path, the streamed-W path, and the
    # padded-vocab (-inf column mask) path.
    labels_in = labels[..., :-1]
    targets = labels[..., 1:].reshape(-1)
    mask_flat = masks[..., 1:].reshape(-1).astype(jnp.float32)
    h_pre = wrapper._model_hidden_pre(fc_feats, att_feats, labels_in, att_masks)
    for kwargs in (dict(tile_rows=8, tile_v=128),                    # resident W, many tiles
                   dict(tile_rows=8, tile_v=128, w_resident=False),  # streamed W slices
                   dict(tile_rows=16, tile_v=384)):                  # padded vocab columns
        alt = jax.block_until_ready(
            lm_masked_nll_loss(h_pre, wrapper.w_out, targets, mask_flat, **kwargs))
        np.testing.assert_allclose(np.asarray(alt), np.asarray(ref),
                                   rtol=1e-4, atol=1e-4)

    print("KERNEL_OK")
</pallas_src>

<mosaic_0001>
module attributes {stable_mosaic.version = 11 : i64} {
  func.func @kernel(%arg0: i32, %arg1: i32, %arg2: memref<16x32xf32, #tpu.memory_space<vmem>>, %arg3: memref<32x512xbf16, #tpu.memory_space<vmem>>, %arg4: memref<16x1xi32, #tpu.memory_space<vmem>>, %arg5: memref<16x1xf32, #tpu.memory_space<vmem>>, %arg6: memref<16x1xf32, #tpu.memory_space<vmem>>, %arg7: memref<16x32xbf16, #tpu.memory_space<vmem>>, %arg8: memref<16x1xf32, #tpu.memory_space<vmem>>, %arg9: memref<16x1xf32, #tpu.memory_space<vmem>>, %arg10: memref<16x1xf32, #tpu.memory_space<vmem>>) attributes {dimension_semantics = [#tpu.dimension_semantics<parallel>, #tpu.dimension_semantics<arbitrary>], iteration_bounds = array<i64: 1, 1>, scalar_prefetch = 0 : i64, scratch_operands = 4 : i64, tpu.core_type = #tpu.core_type<tc>, window_params = [{transform_indices = @transform_0, window_bounds = array<i64: 16, 32>}, {pipeline_mode = #tpu.pipeline_mode<synchronous>, transform_indices = @transform_1, window_bounds = array<i64: 32, 512>}, {transform_indices = @transform_2, window_bounds = array<i64: 16, 1>}, {transform_indices = @transform_3, window_bounds = array<i64: 16, 1>}, {transform_indices = @transform_4, window_bounds = array<i64: 16, 1>}]} {
    %c0_i32 = arith.constant 0 : i32
    %0 = arith.cmpi eq, %arg1, %c0_i32 : i32
    %1 = arith.extui %0 : i1 to i32
    %c0_i32_0 = arith.constant 0 : i32
    %2 = arith.cmpi ne, %1, %c0_i32_0 : i32
    scf.if %2 {
      %c0_24 = arith.constant 0 : index
      %c0_25 = arith.constant 0 : index
      %42 = vector.load %arg2[%c0_24, %c0_25] : memref<16x32xf32, #tpu.memory_space<vmem>>, vector<16x32xf32>
      %43 = math.tanh %42 : vector<16x32xf32>
      %44 = arith.truncf %43 : vector<16x32xf32> to vector<16x32xbf16>
      %c0_26 = arith.constant 0 : index
      %c0_27 = arith.constant 0 : index
      %45 = vector.load %arg7[%c0_26, %c0_27] : memref<16x32xbf16, #tpu.memory_space<vmem>>, vector<16x32xbf16>
      tpu.vector_store %arg7[%c0_26, %c0_27], %44 {strides = array<i32>} : memref<16x32xbf16, #tpu.memory_space<vmem>>, vector<16x32xbf16>,
      %cst_28 = arith.constant 0xFF800000 : f32
      %46 = vector.broadcast %cst_28 : f32 to vector<16x1xf32>
      %c0_29 = arith.constant 0 : index
      %c0_30 = arith.constant 0 : index
      %47 = vector.load %arg8[%c0_29, %c0_30] : memref<16x1xf32, #tpu.memory_space<vmem>>, vector<16x1xf32>
      tpu.vector_store %arg8[%c0_29, %c0_30], %46 {strides = array<i32>} : memref<16x1xf32, #tpu.memory_space<vmem>>, vector<16x1xf32>,
      %cst_31 = arith.constant 0.000000e+00 : f32
      %48 = vector.broadcast %cst_31 : f32 to vector<16x1xf32>
      %c0_32 = arith.constant 0 : index
      %c0_33 = arith.constant 0 : index
      %49 = vector.load %arg9[%c0_32, %c0_33] : memref<16x1xf32, #tpu.memory_space<vmem>>, vector<16x1xf32>
      tpu.vector_store %arg9[%c0_32, %c0_33], %48 {strides = array<i32>} : memref<16x1xf32, #tpu.memory_space<vmem>>, vector<16x1xf32>,
      %cst_34 = arith.constant 0.000000e+00 : f32
      %50 = vector.broadcast %cst_34 : f32 to vector<16x1xf32>
      %c0_35 = arith.constant 0 : index
      %c0_36 = arith.constant 0 : index
      %51 = vector.load %arg10[%c0_35, %c0_36] : memref<16x1xf32, #tpu.memory_space<vmem>>, vector<16x1xf32>
      tpu.vector_store %arg10[%c0_35, %c0_36], %50 {strides = array<i32>} : memref<16x1xf32, #tpu.memory_space<vmem>>, vector<16x1xf32>,
    } else {
    }
    %c512_i32 = arith.constant 512 : i32
    %3 = arith.muli %arg1, %c512_i32 : i32
    %4 = tpu.assume_multiple %3, 128 : i32
    %c0 = arith.constant 0 : index
    %5 = arith.index_cast %4 : i32 to index
    %6 = vector.load %arg3[%c0, %5] : memref<32x512xbf16, #tpu.memory_space<vmem>>, vector<32x512xbf16>
    %c0_1 = arith.constant 0 : index
    %c0_2 = arith.constant 0 : index
    %7 = vector.load %arg7[%c0_1, %c0_2] : memref<16x32xbf16, #tpu.memory_space<vmem>>, vector<16x32xbf16>
    %cst = arith.constant dense<0.000000e+00> : vector<16x512xf32>
    %8 = tpu.matmul %7, %6, %cst {dimension_numbers = #tpu.dot_dimension_numbers<[1], [0], [0], [1], [0, 0, 1, 1], [], []>} : vector<16x32xbf16>, vector<32x512xbf16>, vector<16x512xf32> -> vector<16x512xf32>
    %9 = tpu.iota {dimensions = array<i32: 1>} : vector<16x512xi32>
    %c0_3 = arith.constant 0 : index
    %c0_4 = arith.constant 0 : index
    %10 = vector.load %arg4[%c0_3, %c0_4] : memref<16x1xi32, #tpu.memory_space<vmem>>, vector<16x1xi32>
    %c512_i32_5 = arith.constant 512 : i32
    %11 = arith.muli %arg1, %c512_i32_5 : i32
    %12 = vector.broadcast %11 : i32 to vector<16x1xi32>
    %13 = arith.subi %10, %12 : vector<16x1xi32>
    %c0_6 = arith.constant 0 : index
    %c0_7 = arith.constant 0 : index
    %14 = vector.load %arg10[%c0_6, %c0_7] : memref<16x1xf32, #tpu.memory_space<vmem>>, vector<16x1xf32>
    %15 = vector.broadcast %13 : vector<16x1xi32> to vector<16x512xi32>
    %16 = arith.cmpi eq, %9, %15 : vector<16x512xi32>
    %cst_8 = arith.constant 0.000000e+00 : f32
    %17 = vector.broadcast %cst_8 : f32 to vector<16x512xf32>
    %18 = arith.select %16, %8, %17 : vector<16x512xi1>, vector<16x512xf32>
    %cst_9 = arith.constant dense<0.000000e+00> : vector<16xf32>
    %19 = vector.multi_reduction <add>, %18, %cst_9 [1] : vector<16x512xf32> to vector<16xf32>
    %20 = vector.shape_cast %19 : vector<16xf32> to vector<16x1xf32>
    %21 = arith.addf %14, %20 : vector<16x1xf32>
    %c0_10 = arith.constant 0 : index
    %c0_11 = arith.constant 0 : index
    %22 = vector.load %arg10[%c0_10, %c0_11] : memref<16x1xf32, #tpu.memory_space<vmem>>, vector<16x1xf32>
    tpu.vector_store %arg10[%c0_10, %c0_11], %21 {strides = array<i32>} : memref<16x1xf32, #tpu.memory_space<vmem>>, vector<16x1xf32>,
    %c0_12 = arith.constant 0 : index
    %c0_13 = arith.constant 0 : index
    %23 = vector.load %arg8[%c0_12, %c0_13] : memref<16x1xf32, #tpu.memory_space<vmem>>, vector<16x1xf32>
    %cst_14 = arith.constant dense<0xFF800000> : vector<16xf32>
    %24 = vector.multi_reduction <maximumf>, %8, %cst_14 [1] : vector<16x512xf32> to vector<16xf32>
    %25 = vector.shape_cast %24 : vector<16xf32> to vector<16x1xf32>
    %26 = arith.maximumf %23, %25 : vector<16x1xf32>
    %27 = arith.subf %23, %26 : vector<16x1xf32>
    %28 = math.exp %27 : vector<16x1xf32>
    %c0_15 = arith.constant 0 : index
    %c0_16 = arith.constant 0 : index
    %29 = vector.load %arg9[%c0_15, %c0_16] : memref<16x1xf32, #tpu.memory_space<vmem>>, vector<16x1xf32>
    %30 = arith.mulf %28, %29 : vector<16x1xf32>
    %31 = vector.broadcast %26 : vector<16x1xf32> to vector<16x512xf32>
    %32 = arith.subf %8, %31 : vector<16x512xf32>
    %33 = math.exp %32 : vector<16x512xf32>
    %cst_17 = arith.constant dense<0.000000e+00> : vector<16xf32>
    %34 = vector.multi_reduction <add>, %33, %cst_17 [1] : vector<16x512xf32> to vector<16xf32>
    %35 = vector.shape_cast %34 : vector<16xf32> to vector<16x1xf32>
    %36 = arith.addf %30, %35 : vector<16x1xf32>
    %c0_18 = arith.constant 0 : index
    %c0_19 = arith.constant 0 : index
    %37 = vector.load %arg9[%c0_18, %c0_19] : memref<16x1xf32, #tpu.memory_space<vmem>>, vector<16x1xf32>
    tpu.vector_store %arg9[%c0_18, %c0_19], %36 {strides = array<i32>} : memref<16x1xf32, #tpu.memory_space<vmem>>, vector<16x1xf32>,
    %c0_20 = arith.constant 0 : index
    %c0_21 = arith.constant 0 : index
    %38 = vector.load %arg8[%c0_20, %c0_21] : memref<16x1xf32, #tpu.memory_space<vmem>>, vector<16x1xf32>
    tpu.vector_store %arg8[%c0_20, %c0_21], %26 {strides = array<i32>} : memref<16x1xf32, #tpu.memory_space<vmem>>, vector<16x1xf32>,
    %c0_i32_22 = arith.constant 0 : i32
    %39 = arith.cmpi eq, %arg1, %c0_i32_22 : i32
    %40 = arith.extui %39 : i1 to i32
    %c0_i32_23 = arith.constant 0 : i32
    %41 = arith.cmpi ne, %40, %c0_i32_23 : i32
    scf.if %41 {
      %c0_24 = arith.constant 0 : index
      %c0_25 = arith.constant 0 : index
      %42 = vector.load %arg8[%c0_24, %c0_25] : memref<16x1xf32, #tpu.memory_space<vmem>>, vector<16x1xf32>
      %c0_26 = arith.constant 0 : index
      %c0_27 = arith.constant 0 : index
      %43 = vector.load %arg9[%c0_26, %c0_27] : memref<16x1xf32, #tpu.memory_space<vmem>>, vector<16x1xf32>
      %44 = math.log %43 : vector<16x1xf32>
      %45 = arith.addf %42, %44 : vector<16x1xf32>
      %c0_28 = arith.constant 0 : index
      %c0_29 = arith.constant 0 : index
      %46 = vector.load %arg10[%c0_28, %c0_29] : memref<16x1xf32, #tpu.memory_space<vmem>>, vector<16x1xf32>
      %47 = arith.subf %45, %46 : vector<16x1xf32>
      %c0_30 = arith.constant 0 : index
      %c0_31 = arith.constant 0 : index
      %48 = vector.load %arg5[%c0_30, %c0_31] : memref<16x1xf32, #tpu.memory_space<vmem>>, vector<16x1xf32>
      %49 = arith.mulf %47, %48 : vector<16x1xf32>
      %c0_32 = arith.constant 0 : index
      %c0_33 = arith.constant 0 : index
      %50 = vector.load %arg6[%c0_32, %c0_33] : memref<16x1xf32, #tpu.memory_space<vmem>>, vector<16x1xf32>
      tpu.vector_store %arg6[%c0_32, %c0_33], %49 {strides = array<i32>} : memref<16x1xf32, #tpu.memory_space<vmem>>, vector<16x1xf32>,
    } else {
    }
    return
  }
  func.func @transform_0(%arg0: i32, %arg1: i32) -> (i32, i32) {
    %c0_i32 = arith.constant 0 : i32
    %c0_i32_0 = arith.constant 0 : i32
    return %arg0, %c0_i32 : i32, i32
  }
  func.func @transform_1(%arg0: i32, %arg1: i32) -> (i32, i32) {
    %c0_i32 = arith.constant 0 : i32
    %c0_i32_0 = arith.constant 0 : i32
    %c0_i32_1 = arith.constant 0 : i32
    return %c0_i32, %c0_i32_0 : i32, i32
  }
  func.func @transform_2(%arg0: i32, %arg1: i32) -> (i32, i32) {
    %c0_i32 = arith.constant 0 : i32
    %c0_i32_0 = arith.constant 0 : i32
    return %arg0, %c0_i32 : i32, i32
  }
  func.func @transform_3(%arg0: i32, %arg1: i32) -> (i32, i32) {
    %c0_i32 = arith.constant 0 : i32
    %c0_i32_0 = arith.constant 0 : i32
    return %arg0, %c0_i32 : i32, i32
  }
  func.func @transform_4(%arg0: i32, %arg1: i32) -> (i32, i32) {
    %c0_i32 = arith.constant 0 : i32
    %c0_i32_0 = arith.constant 0 : i32
    return %arg0, %c0_i32 : i32, i32
  }
}

</mosaic_0001>

<bundles_post_ra>
// kernel: tpu_custom_call.1
= control target key start
LH: loop header
LB: loop body
LE: loop exit
PB: predicated region body
PF: predicated region fallthrough
CT: control target
= control target key end

     0   :  { %9 = vsyncpa [#allocation7], 0  ;;  %s759_s0 = inlined_call_operand.hbm [shape: f32[16,32], index: 0, kind: input, shape index: {}]   ;;  %s760_s1 = inlined_call_operand.hbm [shape: bf16[32,512], index: 1, kind: input, shape index: {}]   ;;  %s761_s2 = inlined_call_operand.hbm [shape: s32[16,1], index: 2, kind: input, shape index: {}]   ;;  %s762_s3 = inlined_call_operand.hbm [shape: f32[16,1], index: 3, kind: input, shape index: {}]   ;;  %s763_s4 = inlined_call_operand.hbm [shape: f32[16,1], index: 4, kind: output, shape index: {}]  }
   0x1   :  { %10 = vsyncpa [#allocation10], 0 }
   0x2   :  { %11 = vsyncpa [#allocation13], 0 }
   0x3   :  { %12 = vsyncpa [#allocation8], 0  ;;  %s585_s15 = smov [#allocation9]   ;;  %s467_s19 = scalar_lea.hbm %s760_s1, 1024 }
   0x4   :  { %s30_s16 = sshll.u32 %s585_s15, 4  ;;  %p468_p0 = scmp.ne.s32.totalorder %s760_s1, %s467_s19  ;;  %s31_s16 = int_to_ptr.vmem [resolvable:$true] %s30_s16 }
   0x5   :  { %p471_p1 = scmp.lt.u32.totalorder %s467_s19, %s760_s1 }
   0x7   :  { %p473_p2 = pnand %p471_p1, %p468_p0 }
   0x9   :  { %476 = shalt.err (!%p473_p2)
}
   0xa   :  { %s477_s24 = scalar_lea.vmem %s31_s16, 1024  ;;  %p482_p4 = scmp.lt.s32.totalorder %s31_s16, %s31_s16 }
   0xb   :  { %p478_p3 = scmp.ne.s32.totalorder %s31_s16, %s477_s24  ;;  %p483_p5 = scmp.lt.s32.totalorder %s477_s24, %s477_s24 }
   0xd   :  { %p484_p6 = por %p483_p5, %p482_p4 }
   0xf   :  { %p485_p7 = pnand %p484_p6, %p478_p3 }
  0x11   :  { %488 = shalt.err (!%p485_p7)
}
  0x12   :  { %s586_s25 = smov 256   ;;  %s587_s26 = smov 16  }
  0x13   :  { %36 = dma.hbm_to_vmem [thread:$0]  %s760_s1, 1024, %s31_s16, [#allocation10], %s586_s25, %s586_s25, %s587_s26  }
  0x14   :  { %s588_s29 = smov [#allocation6]   ;;  %s489_s7 = scalar_lea.hbm %s759_s0, 256 }
  0x15   :  { %s18_s30 = sshll.u32 %s588_s29, 4  ;;  %p490_p8 = scmp.ne.s32.totalorder %s759_s0, %s489_s7  ;;  %s19_s30 = int_to_ptr.vmem [resolvable:$true] %s18_s30 }
  0x16   :  { %p493_p9 = scmp.lt.u32.totalorder %s489_s7, %s759_s0 }
  0x18   :  { %p495_p10 = pnand %p493_p9, %p490_p8 }
  0x1a   :  { %498 = shalt.err (!%p495_p10)
}
  0x1b   :  { %s499_s12 = scalar_lea.vmem %s19_s30, 256  ;;  %p504_p12 = scmp.lt.s32.totalorder %s19_s30, %s19_s30 }
  0x1c   :  { %p500_p11 = scmp.ne.s32.totalorder %s19_s30, %s499_s12  ;;  %p505_p13 = scmp.lt.s32.totalorder %s499_s12, %s499_s12 }
  0x1e   :  { %p506_p0 = por %p505_p13, %p504_p12 }
  0x20   :  { %p507_p1 = pnand %p506_p0, %p500_p11 }
  0x22   :  { %510 = shalt.err (!%p507_p1)
}
  0x23   :  { %s589_s1 = smov 128   ;;  %s590_s13 = smov 8  }
  0x24   :  { %24 = dma.hbm_to_vmem [thread:$0]  %s759_s0, 256, %s19_s30, [#allocation7], %s589_s1, %s589_s1, %s590_s13  }
  0x25   :  { %s591_s16 = smov [#allocation11]   ;;  %s592_s18 = smov [#allocation12]  }
  0x26   :  { %s42_s17 = sshll.u32 %s591_s16, 4  ;;  %s54_s19 = sshll.u32 %s592_s18, 4  ;;  %s43_s17 = int_to_ptr.vmem [resolvable:$true] %s42_s17  ;;  %s649_s19 = int_to_ptr.vmem [resolvable:$true] %s54_s19 }
  0x27   :  { %s511_s22 = scalar_lea.hbm %s761_s2, 256 }
  0x28   :  { %p512_p2 = scmp.ne.s32.totalorder %s761_s2, %s511_s22  ;;  %p515_p3 = scmp.lt.u32.totalorder %s511_s22, %s761_s2 }
  0x2a   :  { %p517_p4 = pnand %p515_p3, %p512_p2 }
  0x2c   :  { %520 = shalt.err (!%p517_p4)
}
  0x2d   :  { %s521_s0 = scalar_lea.vmem %s43_s17, 256  ;;  %p526_p6 = scmp.lt.s32.totalorder %s43_s17, %s43_s17 }
  0x2e   :  { %p522_p5 = scmp.ne.s32.totalorder %s43_s17, %s521_s0  ;;  %p527_p7 = scmp.lt.s32.totalorder %s521_s0, %s521_s0 }
  0x30   :  { %p528_p8 = por %p527_p7, %p526_p6 }
  0x32   :  { %p529_p9 = pnand %p528_p8, %p522_p5 }
  0x34   :  { %532 = shalt.err (!%p529_p9)
}
  0x35   :  { %48 = dma.hbm_to_vmem [thread:$0]  %s761_s2, 256, %s43_s17, [#allocation10], %s589_s1, %s589_s1, %s590_s13  }
  0x36   :  { %s533_s5 = scalar_lea.hbm %s762_s3, 256 }
  0x37   :  { %p534_p10 = scmp.ne.s32.totalorder %s762_s3, %s533_s5  ;;  %p537_p11 = scmp.lt.u32.totalorder %s533_s5, %s762_s3 }
  0x39   :  { %p539_p12 = pnand %p537_p11, %p534_p10 }
  0x3b   :  { %542 = shalt.err (!%p539_p12)
}
  0x3c   :  { %s543_s10 = scalar_lea.vmem %s649_s19, 256  ;;  %p548_p0 = scmp.lt.s32.totalorder %s649_s19, %s649_s19 }
  0x3d   :  { %p544_p13 = scmp.ne.s32.totalorder %s649_s19, %s543_s10  ;;  %p549_p1 = scmp.lt.s32.totalorder %s543_s10, %s543_s10 }
  0x3f   :  { %p550_p2 = por %p549_p1, %p548_p0 }
  0x41   :  { %p551_p3 = pnand %p550_p2, %p544_p13 }
  0x43   :  { %554 = shalt.err (!%p551_p3)
}
  0x44   :  { %60 = dma.hbm_to_vmem [thread:$0]  %s762_s3, 256, %s649_s19, [#allocation13], %s589_s1, %s589_s1, %s590_s13  }
  0x45   :  { %577 = dma.done.wait [#allocation7], 256  }
  0x46   :  { %578 = vsyncadd [#allocation7], 4294967040 }
  0x47   :  { %579 = dma.done.wait [#allocation10], 1280  }
  0x48   :  { %580 = vsyncadd [#allocation10], 4294966016 }
  0x49   :  { %581 = dma.done.wait [#allocation13], 256  }
  0x4a   :  { %582 = vsyncadd [#allocation13], 4294967040  ;;  %v593_v0 = vmov 0   ;;  %v427_v1 = vld [vmem:[#allocation9 + $0x4] ss:$16 sps:$4 sm:$0xff]   ;;  %v79_v10 = vld [vmem:[#allocation6 + $0x8] sm:$0xff]  ;;  %v236_v35 = vlaneseq }
  0x4b   :  { %182 = vmatprep.mubr.bf16.mxu0 %v593_v0  ;;  %225 = vmatprep.mubr.bf16.mxu1 %v593_v0  ;;  %v429_v2 = vld [vmem:[#allocation9 + $0xc] ss:$16 sps:$4 sm:$0xff]   ;;  %v431_v3 = vld [vmem:[#allocation9] ss:$16 sps:$4 sm:$0xff]   ;;  %v432_v4 = vld [vmem:[#allocation9 + $0x8] ss:$16 sps:$4 sm:$0xff]  }
  0x4c   :  { %426 = vset.pattern.permute.xlu0 %v593_v0  ;;  %425 = vset.pattern.permute.xlu1 %v593_v0  ;;  %v433_v5 = vld [vmem:[#allocation9 + $0x24] ss:$16 sps:$4 sm:$0xff]   ;;  %v435_v6 = vld [vmem:[#allocation9 + $0x2c] ss:$16 sps:$4 sm:$0xff]   ;;  %v437_v7 = vld [vmem:[#allocation9 + $0x20] ss:$16 sps:$4 sm:$0xff]  }
  0x4d   :  { %150 = vmatprep.subr.bf16.mxu0 %v427_v1  ;;  %193 = vmatprep.subr.bf16.mxu1 %v429_v2  ;;  %v438_v8 = vld [vmem:[#allocation9 + $0x28] ss:$16 sps:$4 sm:$0xff]   ;;  %v78_v9 = vld [vmem:[#allocation6] sm:$0xff]  ;;  %vm83_vm0 = vcmask 261120   ;;  %vm85_vm1 = vcmask 7168   ;;  %v594_v15 = vmov -inf  }
  0x4e   :  { %151 = vmatpush1.bf16.msra.mxu0 %v431_v3  ;;  %194 = vmatpush1.bf16.msra.mxu1 %v432_v4  ;;  %439 = vtanh.f32 %v78_v9  ;;  %86 = vst.msk [vmem:[#allocation3] sm:$0xff] %vm85_vm1, %v594_v15  ;;  %87 = vst.msk [vmem:[#allocation3 + $0x8] sm:$0xff] %vm85_vm1, %v594_v15  ;;  %v241_v30 = vld [vmem:[#allocation11] sm:$0xff]  ;;  %v595_v31 = vmov 0.0   ;;  %v237_v40 = vand.u32 127, %v236_v35  ;;  %v242_v42 = vld [vmem:[#allocation11 + $0x8] sm:$0xff] }
  0x4f   :  { %152 = vmatprep.subr.bf16.mxu0 %v433_v5  ;;  %195 = vmatprep.subr.bf16.mxu1 %v435_v6  ;;  %441 = vtanh.f32 %v79_v10  ;;  %90 = vst.msk [vmem:[#allocation5] sm:$0xff] %vm85_vm1, %v595_v31  ;;  %88 = vst.msk [vmem:[#allocation4] sm:$0xff] %vm85_vm1, %v595_v31  ;;  %s596_s3 = smov [#allocation14]  }
  0x50   :  { %89 = vst.msk [vmem:[#allocation4 + $0x8] sm:$0xff] %vm85_vm1, %v595_v31  ;;  %91 = vst.msk [vmem:[#allocation5 + $0x8] sm:$0xff] %vm85_vm1, %v595_v31  ;;  %v238_v43 = vadd.s32 128, %v237_v40  ;;  %v239_v44 = vadd.s32 256, %v237_v40  ;;  %v240_v45 = vadd.s32 384, %v237_v40  ;;  %s387_s12 = sshll.u32 %s596_s3, 4  ;;  %s388_s12 = int_to_ptr.vmem [resolvable:$true] %s387_s12 }
  0x51   :  { %s555_s14 = scalar_lea.vmem %s388_s12, 256  ;;  %p560_p5 = scmp.lt.s32.totalorder %s388_s12, %s388_s12 }
  0x52   :  { %153 = vmatpush1.bf16.msra.mxu0 %v437_v7  ;;  %196 = vmatpush1.bf16.msra.mxu1 %v438_v8  ;;  %p556_p4 = scmp.ne.s32.totalorder %s388_s12, %s555_s14  ;;  %p561_p6 = scmp.lt.s32.totalorder %s555_s14, %s555_s14 }
  0x54   :  { %p562_p7 = por %p561_p6, %p560_p5 }
  0x55   :  { %v704_v32 = vld [vmem:[#allocation3] sm:$0xff]  ;;  %v709_v36 = vld [vmem:[#allocation3 + $0x8] sm:$0xff] }
  0x56   :  { %v246_v31 = vld [vmem:[#allocation5] sm:$0xff]  ;;  %p563_p8 = pnand %p562_p7, %p556_p4 }
  0x58   :  { %v440_v11 = vpop.eup %439 }
  0x59   :  { %v442_v12 = vpop.eup %441 }
  0x5a   :  { %v82_v13 = vpack.c.bf16 %v442_v12, %v440_v11 }
  0x5c   :  { %84 = vst.msk [vmem:[#allocation2] sm:$0xff] %vm83_vm0, %v82_v13 }
  0x63   :  { %v105_v14 = vld [vmem:[#allocation2] sm:$0xff] }
  0x64   :  { %411 = vmatmul.mubr.msk.bf16.vlgmr.msra.gmra.mrb[0].mxu0 %vm83_vm0, %v105_v14  ;;  %412 = vmatmul.mubr.msk.bf16.vlgmr.msra.gmra.mrb[0].mxu1 %vm83_vm0, %v105_v14 }
 0x137   :  { %v184_v16 = vpop.f32.mrb[0].mxu0  ;;  %v227_v17 = vpop.f32.mrb[0].mxu1 }
 0x138   :  { %v186_v18 = vpop.f32.mrb[1].mxu0  ;;  %v229_v19 = vpop.f32.mrb[1].mxu1  ;;  %v287_v20 = vmax.f32 %v184_v16, %v227_v17 }
 0x139   :  { %v688_v21 = vpop.f32.mrb[2].mxu0  ;;  %v690_v22 = vpop.f32.mrb[2].mxu1  ;;  %v288_v23 = vmax.f32 %v186_v18, %v229_v19 }
 0x13a   :  { %v692_v24 = vpop.f32.mrb[3].mxu0  ;;  %v694_v25 = vpop.f32.mrb[3].mxu1  ;;  %v292_v26 = vmax.f32 %v688_v21, %v690_v22 }
 0x13b   :  { %v293_v27 = vmax.f32 %v692_v24, %v694_v25  ;;  %v289_v28 = vmax.f32 %v287_v20, %v288_v23 }
 0x13d   :  { %290 = vmax.xlane.f32.xlu0 %v289_v28  ;;  %v294_v29 = vmax.f32 %v292_v26, %v293_v27 }
 0x141   :  { %295 = vmax.xlane.f32.xlu0 %v294_v29 }
 0x157   :  { %249 = vperm.xlu0 %426, %v241_v30  }
 0x1ca   :  { %v291_v33 = vpop.xlane.xlu0 %290 }
 0x1cb   :  { %v707_v34 = vmax.f32 %v704_v32, %v291_v33 }
 0x1cd   :  { %v299_v37 = vsub.f32 %v704_v32, %v707_v34  ;;  %357 = vst.msk [vmem:[#allocation3] sm:$0xff] %vm85_vm1, %v707_v34  ;;  %311 = vperm.xlu1 %425, %v707_v34   ;;  %v247_v32 = vld [vmem:[#allocation5 + $0x8] sm:$0xff] }
 0x1ce   :  { %v296_v38 = vpop.xlane.xlu0 %295 }
 0x1cf   :  { %v717_v39 = vmax.f32 %v709_v36, %v296_v38  ;;  %v301_v35 = vmul.f32 1.442695, %v299_v37 }
 0x1d1   :  { %v300_v41 = vsub.f32 %v709_v36, %v717_v39  ;;  %358 = vst.msk [vmem:[#allocation3 + $0x8] sm:$0xff] %vm85_vm1, %v717_v39  ;;  %316 = vperm.xlu1 %425, %v717_v39  }
 0x1d3   :  { %v303_v38 = vmul.f32 1.442695, %v300_v41 }
 0x1d5   :  { %252 = vperm.xlu1 %425, %v242_v42   ;;  %v305_v42 = vld [vmem:[#allocation4] sm:$0xff] }
 0x1d6   :  { %v250_v46 = vpop.permute.xlu0 %249 }
 0x1d7   :  { %vm254_vm2 = vcmp.eq.s32.totalorder %v237_v40, %v250_v46  ;;  %vm255_vm3 = vcmp.eq.s32.totalorder %v238_v43, %v250_v46  ;;  %vm256_vm4 = vcmp.eq.s32.totalorder %v239_v44, %v250_v46  ;;  %vm257_vm5 = vcmp.eq.s32.totalorder %v240_v45, %v250_v46  ;;  %v306_v46 = vld [vmem:[#allocation4 + $0x8] sm:$0xff] }
 0x1d8   :  { %v262_v47 = vsel %vm254_vm2, %v184_v16, 0.0  ;;  %v263_v48 = vsel %vm255_vm3, %v186_v18, 0.0  ;;  %v264_v50 = vsel %vm256_vm4, %v227_v17, 0.0  ;;  %v265_v52 = vsel %vm257_vm5, %v229_v19, 0.0 }
 0x1d9   :  { %v270_v49 = vadd.f32 %v263_v48, %v262_v47 }
 0x1db   :  { %v271_v51 = vadd.f32 %v270_v49, %v264_v50 }
 0x1dd   :  { %v272_v53 = vadd.f32 %v271_v51, %v265_v52  ;;  %v362_v52 = vld [vmem:[#allocation3] sm:$0xff] }
 0x1df   :  { %273 = vadd.xlane.f32.xlu0 %v272_v53 }
 0x24c   :  { %v312_v54 = vpop.permute.xlu1 %311 }
 0x24d   :  { %v319_v55 = vsub.f32 %v184_v16, %v312_v54  ;;  %v320_v56 = vsub.f32 %v186_v18, %v312_v54  ;;  %v321_v57 = vsub.f32 %v227_v17, %v312_v54  ;;  %v322_v58 = vsub.f32 %v229_v19, %v312_v54 }
 0x24f   :  { %v327_v59 = vmul.f32 1.442695, %v319_v55  ;;  %v329_v60 = vmul.f32 1.442695, %v320_v56  ;;  %v331_v61 = vmul.f32 1.442695, %v321_v57 }
 0x250   :  { %v333_v62 = vmul.f32 1.442695, %v322_v58  ;;  %v317_v63 = vpop.permute.xlu1 %316  ;;  %v376_v56 = vld [vmem:[#allocation12] sm:$0xff] }
 0x251   :  { %443 = vpow2.f32 %v327_v59  ;;  %v323_v0 = vsub.f32 %v688_v21, %v317_v63  ;;  %v324_v1 = vsub.f32 %v692_v24, %v317_v63  ;;  %v325_v2 = vsub.f32 %v690_v22, %v317_v63  ;;  %v363_v59 = vld [vmem:[#allocation3 + $0x8] sm:$0xff] }
 0x252   :  { %445 = vpow2.f32 %v329_v60  ;;  %v326_v3 = vsub.f32 %v694_v25, %v317_v63  ;;  %v377_v63 = vld [vmem:[#allocation12 + $0x8] sm:$0xff] }
 0x253   :  { %447 = vpow2.f32 %v331_v61  ;;  %v335_v4 = vmul.f32 1.442695, %v323_v0  ;;  %v337_v5 = vmul.f32 1.442695, %v324_v1  ;;  %v339_v6 = vmul.f32 1.442695, %v325_v2 }
 0x254   :  { %449 = vpow2.f32 %v333_v62  ;;  %v253_v7 = vpop.permute.xlu1 %252  ;;  %v341_v8 = vmul.f32 1.442695, %v326_v3 }
 0x255   :  { %451 = vpow2.f32 %v335_v4  ;;  %vm258_vm6 = vcmp.eq.s32.totalorder %v237_v40, %v253_v7  ;;  %vm259_vm7 = vcmp.eq.s32.totalorder %v238_v43, %v253_v7  ;;  %vm260_vm8 = vcmp.eq.s32.totalorder %v239_v44, %v253_v7 }
 0x256   :  { %453 = vpow2.f32 %v337_v5  ;;  %v266_v9 = vsel %vm258_vm6, %v688_v21, 0.0  ;;  %v267_v10 = vsel %vm259_vm7, %v692_v24, 0.0  ;;  %vm261_vm9 = vcmp.eq.s32.totalorder %v240_v45, %v253_v7 }
 0x257   :  { %v275_v11 = vadd.f32 %v267_v10, %v266_v9  ;;  %455 = vpow2.f32 %v339_v6  ;;  %v268_v12 = vsel %vm260_vm8, %v690_v22, 0.0  ;;  %v269_v14 = vsel %vm261_vm9, %v694_v25, 0.0 }
 0x258   :  { %457 = vpow2.f32 %v341_v8 }
 0x259   :  { %v276_v13 = vadd.f32 %v275_v11, %v268_v12  ;;  %459 = vpow2.f32 %v301_v35 }
 0x25a   :  { %461 = vpow2.f32 %v303_v38 }
 0x25b   :  { %v444_v15 = vpop.eup %443  ;;  %v277_v16 = vadd.f32 %v276_v13, %v269_v14 }
 0x25c   :  { %v446_v17 = vpop.eup %445 }
 0x25d   :  { %v448_v18 = vpop.eup %447  ;;  %v343_v19 = vadd.f32 %v446_v17, %v444_v15 }
 0x25e   :  { %v450_v20 = vpop.eup %449 }
 0x25f   :  { %v452_v23 = vpop.eup %451  ;;  %v344_v26 = vadd.f32 %v448_v18, %v343_v19 }
 0x260   :  { %v454_v21 = vpop.eup %453 }
 0x261   :  { %v345_v27 = vadd.f32 %v450_v20, %v344_v26  ;;  %v348_v24 = vadd.f32 %v454_v21, %v452_v23  ;;  %v456_v28 = vpop.eup %455 }
 0x262   :  { %v458_v30 = vpop.eup %457 }
 0x263   :  { %346 = vadd.xlane.f32.xlu1 %v345_v27  ;;  %v349_v29 = vadd.f32 %v456_v28, %v348_v24  ;;  %v460_v40 = vpop.eup %459 }
 0x264   :  { %v307_v43 = vmul.f32 %v460_v40, %v305_v42  ;;  %v462_v44 = vpop.eup %461 }
 0x265   :  { %v350_v22 = vadd.f32 %v458_v30, %v349_v29  ;;  %v308_v48 = vmul.f32 %v462_v44, %v306_v46 }
 0x267   :  { %351 = vadd.xlane.f32.xlu1 %v350_v22 }
 0x26b   :  { %278 = vadd.xlane.f32.xlu1 %v277_v16 }
 0x26c   :  { %v274_v25 = vpop.xlane.xlu0 %273 }
 0x26d   :  { %v280_v33 = vadd.f32 %v274_v25, %v246_v31 }
 0x26f   :  { %283 = vst.msk [vmem:[#allocation5] sm:$0xff] %vm85_vm1, %v280_v33 }
 0x276   :  { %v372_v55 = vld [vmem:[#allocation5] sm:$0xff] }
 0x2f0   :  { %v347_v45 = vpop.xlane.xlu1 %346 }
 0x2f1   :  { %v353_v47 = vadd.f32 %v347_v45, %v307_v43 }
 0x2f3   :  { %355 = vst.msk [vmem:[#allocation4] sm:$0xff] %vm85_vm1, %v353_v47 }
 0x2f4   :  { %v352_v49 = vpop.xlane.xlu1 %351 }
 0x2f5   :  { %v354_v50 = vadd.f32 %v352_v49, %v308_v48 }
 0x2f7   :  { %356 = vst.msk [vmem:[#allocation4 + $0x8] sm:$0xff] %vm85_vm1, %v354_v50 }
 0x2f8   :  { %v279_v34 = vpop.xlane.xlu1 %278 }
 0x2f9   :  { %v281_v37 = vadd.f32 %v279_v34, %v247_v32 }
 0x2fa   :  { %v364_v36 = vld [vmem:[#allocation4] sm:$0xff] }
 0x2fb   :  { %284 = vst.msk [vmem:[#allocation5 + $0x8] sm:$0xff] %vm85_vm1, %v281_v37  ;;  %463 = vlog2.f32 %v364_v36 }
 0x2fe   :  { %v365_v39 = vld [vmem:[#allocation4 + $0x8] sm:$0xff] }
 0x2ff   :  { %465 = vlog2.f32 %v365_v39 }
 0x302   :  { %v373_v62 = vld [vmem:[#allocation5 + $0x8] sm:$0xff] }
 0x305   :  { %v464_v41 = vpop.eup %463 }
 0x306   :  { %v367_v51 = vmul.f32 0.6931472, %v464_v41 }
 0x308   :  { %v370_v53 = vadd.f32 %v367_v51, %v362_v52 }
 0x309   :  { %v466_v54 = vpop.eup %465 }
 0x30a   :  { %v369_v57 = vmul.f32 0.6931472, %v466_v54  ;;  %v374_v58 = vsub.f32 %v370_v53, %v372_v55 }
 0x30c   :  { %v371_v60 = vadd.f32 %v369_v57, %v363_v59  ;;  %v378_v61 = vmul.f32 %v376_v56, %v374_v58 }
 0x30e   :  { %v375_v0 = vsub.f32 %v371_v60, %v373_v62  ;;  %380 = vst.msk [vmem:[#allocation14] sm:$0xff] %vm85_vm1, %v378_v61 }
 0x310   :  { %v379_v1 = vmul.f32 %v377_v63, %v375_v0 }
 0x312   :  { %381 = vst.msk [vmem:[#allocation14 + $0x8] sm:$0xff] %vm85_vm1, %v379_v1 }
 0x313   :  { %566 = shalt.err (!%p563_p8)
}
 0x314   :  { %s567_s17 = scalar_lea.hbm %s763_s4, 256 }
 0x315   :  { %p568_p9 = scmp.ne.s32.totalorder %s763_s4, %s567_s17  ;;  %p571_p10 = scmp.lt.u32.totalorder %s567_s17, %s763_s4 }
 0x317   :  { %p573_p11 = pnand %p571_p10, %p568_p9 }
 0x319   :  { %576 = shalt.err (!%p573_p11)
}
 0x31a   :  { %393 = dma.vmem_to_hbm [thread:$0]  %s388_s12, 256, %s763_s4, [#allocation8], %s589_s1, %s589_s1, %s590_s13  }
 0x31b   :  { %583 = dma.done.wait [#allocation8], 256  }
 0x31c   :  { %584 = vsyncadd [#allocation8], 4294967040 }
 0x31d   :  { %397 = vsyncpa [#allocation7], 1 }
 0x31e   :  { %398 = vsyncpa [#allocation10], 1 }
 0x31f   :  { %399 = vsyncpa [#allocation13], 1 }
 0x320   :  { %400 = vsyncpa [#allocation8], 1 }

</bundles_post_ra>
